<compile_context>
chip_gen: v7x
topology: tpu7x:2x2x1
jax: 0.10.0
libtpu: 0.0.40
codegen_flags: <defaults>
</compile_context>

<pallas_src>
import math

import jax
import jax.numpy as jnp
from jax.experimental import pallas as pl
from jax.experimental.pallas import tpu as pltpu


def _ggnn_kernel(h0_ref, a_ref, wcomb_ref, whh_ref, bgi_ref, bhn_ref, out_ref):
    """GatedGraphConv: num_layers x (aggregate -> GRUCell), then ReLU.

    Shapes (HP = lane-padded hidden size, multiple of 128):
      h0_ref   : (N, HP)       initial node embeddings, f32, zero-padded lanes
      a_ref    : (N, N)        dense adjacency, A[dst, src] = #edges src->dst (f32 or bf16)
      wcomb_ref: (L, HP, 3HP)  fused weights  W_comb[l] = gated_w[l] @ W_ih^T  (gate order r,z,n)
      whh_ref  : (HP, 3HP)     GRU hidden weights, pre-transposed, gates concatenated
      bgi_ref  : (1, 3HP)      combined bias  [b_ir+b_hr, b_iz+b_hz, b_in]
      bhn_ref  : (1, HP)       hidden bias of the n gate (sits inside r * (.))
      out_ref  : (N, HP)       relu(hidden), lane-dense
    """
    dot_dtype = a_ref.dtype                      # f32 (exact) or bf16 (v6e/v7x MXU)
    A = a_ref[...]
    W_hh = whh_ref[...]                          # loaded once, reused every layer
    h = h0_ref[...]                              # f32 state for the gate math
    N, HP = h.shape
    num_layers = wcomb_ref.shape[0]

    # Hoisted bias broadcasts (JAX does not CSE broadcast_in_dim inside loops).
    b_gi = jnp.broadcast_to(bgi_ref[...], (N, 3 * HP))
    b_hn = jnp.broadcast_to(bhn_ref[...], (N, HP))

    # Static layer loop (L is tiny).  TODO(synk): if L grows, switch to
    # lax.fori_loop with dynamic wcomb_ref[l] so live ranges stay bounded.
    for l in range(num_layers):
        hc = h.astype(dot_dtype)
        # aggregate neighbours:  ah[dst] = sum_{src in N(dst)} h[src]
        ah = jnp.dot(A, hc, preferred_element_type=jnp.float32)                  # (N, HP)
        # fused message + GRU input path:  gi = (A h) (W_l W_ih^T) + b
        gi = jnp.dot(ah.astype(dot_dtype), wcomb_ref[l],
                     preferred_element_type=jnp.float32) + b_gi                  # (N, 3HP)
        # GRU hidden path (bias-free; r/z hidden biases folded into b_gi)
        gh = jnp.dot(hc, W_hh, preferred_element_type=jnp.float32)               # (N, 3HP)

        # PyTorch GRUCell gate order r, z, n; slices are 128-lane aligned.
        r = jax.nn.sigmoid(gi[:, 0:HP] + gh[:, 0:HP])
        z = jax.nn.sigmoid(gi[:, HP:2 * HP] + gh[:, HP:2 * HP])
        n = jnp.tanh(gi[:, 2 * HP:3 * HP] + r * (gh[:, 2 * HP:3 * HP] + b_hn))
        h = n + z * (h - n)        # == (1 - z) * n + z * h

    out_ref[...] = jnp.maximum(h, 0.0)           # F.relu, lane-dense store


def _round_up(x, m):
    return (x + m - 1) // m * m


def gnn_forward(x_idx, edge_index, params, *, dot_dtype=jnp.float32):
    """Mirrors GNNModel.forward: embedding(x).squeeze() -> GatedGraphConv -> relu.

    dot_dtype: operand dtype for the three MXU matmuls.  Use jnp.bfloat16 on
    v6e/v7x for the bf16 MXU path (edge multiplicities exact in bf16 up to 256);
    accumulation and all gate math stay f32 either way.
    """
    emb = params["embedding"]
    H = emb.shape[1]
    HP = _round_up(H, 128)                        # lane-dense hidden size
    L = params["gated_w"].shape[0]

    # embedding lookup + squeeze (data-dependent gather kept as JAX glue)
    h0 = emb[x_idx.reshape(-1)].astype(jnp.float32)            # (N, H)
    N = h0.shape[0]
    h0p = jnp.pad(h0, ((0, 0), (0, HP - H)))                   # (N, HP)

    # dense adjacency: agg[dst] += m[src] for every edge (src, dst)
    src, dst = edge_index[0], edge_index[1]
    A = jnp.zeros((N, N), jnp.float32).at[dst, src].add(1.0).astype(dot_dtype)

    def pad_gate_mat(w):                          # (H, 3H) -> (HP, 3HP), per-gate blocks
        w3 = w.reshape(H, 3, H)
        w3 = jnp.pad(w3, ((0, HP - H), (0, 0), (0, HP - H)))
        return w3.reshape(HP, 3 * HP)

    def pad_gate_vec(b):                          # (3H,) -> (1, 3HP)
        b3 = b.reshape(3, H)
        b3 = jnp.pad(b3, ((0, 0), (0, HP - H)))
        return b3.reshape(1, 3 * HP)

    w_ih_t = params["w_ih"].T.astype(jnp.float32)              # (H, 3H), gate order r,z,n
    w_hh_t = params["w_hh"].T.astype(jnp.float32)              # (H, 3H)
    gated_w = params["gated_w"].astype(jnp.float32)            # (L, H, H)
    # Fold the per-layer message weight into the GRU input path (exact):
    #   gi = (A @ h) @ (W_l @ W_ih^T)
    w_comb = jnp.einsum("lij,jk->lik", gated_w, w_ih_t)        # (L, H, 3H)
    w_comb_p = jnp.stack([pad_gate_mat(w_comb[l]) for l in range(L)]).astype(dot_dtype)
    w_hh_p = pad_gate_mat(w_hh_t).astype(dot_dtype)

    b_ih = params["b_ih"].astype(jnp.float32)
    b_hh = params["b_hh"].astype(jnp.float32)
    # r/z hidden biases folded into the input-path bias; b_hn kept separate
    # because it sits inside r * (.) in the GRU n gate.
    b_gi = jnp.concatenate([b_ih[: 2 * H] + b_hh[: 2 * H], b_ih[2 * H:]])
    b_gi_p = pad_gate_vec(b_gi)                                 # (1, 3HP)
    b_hn_p = jnp.pad(b_hh[2 * H:], (0, HP - H)).reshape(1, HP)  # (1, HP)

    args = (h0p, A, w_comb_p, w_hh_p, b_gi_p, b_hn_p)
    resident = sum(int(a.size) * a.dtype.itemsize for a in args) + N * HP * 4
    # 3x margin for gi/gh/ah intermediates; floor at the default-ish 16 MiB,
    # cap at 64 MiB so the same limit is valid on v7x (64 MiB/TC VMEM).
    vmem_limit = int(min(64 << 20, max(16 << 20, 3 * resident)))

    vmem = pl.BlockSpec(memory_space=pltpu.MemorySpace.VMEM)
    out_p = pl.pallas_call(
        _ggnn_kernel,
        out_shape=jax.ShapeDtypeStruct((N, HP), jnp.float32),
        in_specs=[vmem] * len(args),
        out_specs=vmem,
        compiler_params=pltpu.CompilerParams(vmem_limit_bytes=vmem_limit),
    )(*args)
    return out_p[:, :H]                           # drop zero padding lanes


def reference_forward(x_idx, edge_index, params):
    """Pure-JAX reference of the PyTorch forward for a correctness check."""
    h = params["embedding"][x_idx.reshape(-1)]
    src, dst = edge_index[0], edge_index[1]
    w_ih, w_hh = params["w_ih"], params["w_hh"]
    b_ih, b_hh = params["b_ih"], params["b_hh"]
    for l in range(params["gated_w"].shape[0]):
        m = h @ params["gated_w"][l]
        agg = jnp.zeros_like(m).at[dst].add(m[src])
        gi = agg @ w_ih.T + b_ih
        gh = h @ w_hh.T + b_hh
        i_r, i_z, i_n = jnp.split(gi, 3, axis=1)
        h_r, h_z, h_n = jnp.split(gh, 3, axis=1)
        r = jax.nn.sigmoid(i_r + h_r)
        z = jax.nn.sigmoid(i_z + h_z)
        n = jnp.tanh(i_n + r * h_n)
        h = n + z * (h - n)
    return jax.nn.relu(h)


if __name__ == "__main__":
    HIDDEN, N_NODE, NUM_LAYERS = 32, 50, 2
    N_NODES_IN_GRAPH, N_EDGES = 16, 24

    key = jax.random.PRNGKey(0)
    k = jax.random.split(key, 8)
    stdv = 1.0 / math.sqrt(HIDDEN)

    def u(kk, shape):
        return jax.random.uniform(kk, shape, jnp.float32, -stdv, stdv)

    # reset_parameters(): every parameter ~ U(-stdv, stdv)
    params = dict(
        embedding=u(k[0], (N_NODE, HIDDEN)),              # nn.Embedding
        gated_w=u(k[1], (NUM_LAYERS, HIDDEN, HIDDEN)),    # GatedGraphConv.weight
        w_ih=u(k[2], (3 * HIDDEN, HIDDEN)),               # GRUCell.weight_ih
        w_hh=u(k[3], (3 * HIDDEN, HIDDEN)),               # GRUCell.weight_hh
        b_ih=u(k[4], (3 * HIDDEN,)),                      # GRUCell.bias_ih
        b_hh=u(k[5], (3 * HIDDEN,)),                      # GRUCell.bias_hh
    )

    # data.x (node item ids, shape (N,1) so .squeeze() -> (N,H)), data.edge_index, data.batch
    x = jax.random.randint(k[6], (N_NODES_IN_GRAPH, 1), 0, N_NODE, jnp.int32)
    edge_index = jax.random.randint(k[7], (2, N_EDGES), 0, N_NODES_IN_GRAPH, jnp.int32)
    batch = jnp.zeros((N_NODES_IN_GRAPH,), jnp.int32)  # unused by forward

    ref = reference_forward(x, edge_index, params)

    # Exact path (f32 dot operands): bit-close to the PyTorch reference.
    out = jax.block_until_ready(gnn_forward(x, edge_index, params, dot_dtype=jnp.float32))
    assert out.shape == (N_NODES_IN_GRAPH, HIDDEN)
    assert jnp.allclose(out, ref, atol=1e-4, rtol=1e-4), "f32 mismatch vs reference"

    # v6e/v7x MXU recipe: bf16 dot operands, f32 accumulation + f32 gate math.
    out_bf16 = jax.block_until_ready(gnn_forward(x, edge_index, params, dot_dtype=jnp.bfloat16))
    assert jnp.allclose(out_bf16, ref, atol=5e-2, rtol=5e-2), "bf16 mismatch vs reference"

    print("KERNEL_OK")
</pallas_src>

<mosaic_0001>
module attributes {stable_mosaic.version = 11 : i64} {
  func.func @_ggnn_kernel(%arg0: memref<16x128xf32, #tpu.memory_space<vmem>>, %arg1: memref<16x16xf32, #tpu.memory_space<vmem>>, %arg2: memref<2x128x384xf32, #tpu.memory_space<vmem>>, %arg3: memref<128x384xf32, #tpu.memory_space<vmem>>, %arg4: memref<1x384xf32, #tpu.memory_space<vmem>>, %arg5: memref<1x128xf32, #tpu.memory_space<vmem>>, %arg6: memref<16x128xf32, #tpu.memory_space<vmem>>) attributes {dimension_semantics = [], scalar_prefetch = 0 : i64, scratch_operands = 0 : i64, tpu.core_type = #tpu.core_type<tc>} {
    %c0 = arith.constant 0 : index
    %c0_0 = arith.constant 0 : index
    %0 = vector.load %arg1[%c0, %c0_0] : memref<16x16xf32, #tpu.memory_space<vmem>>, vector<16x16xf32>
    %c0_1 = arith.constant 0 : index
    %c0_2 = arith.constant 0 : index
    %1 = vector.load %arg3[%c0_1, %c0_2] : memref<128x384xf32, #tpu.memory_space<vmem>>, vector<128x384xf32>
    %c0_3 = arith.constant 0 : index
    %c0_4 = arith.constant 0 : index
    %2 = vector.load %arg0[%c0_3, %c0_4] : memref<16x128xf32, #tpu.memory_space<vmem>>, vector<16x128xf32>
    %c0_5 = arith.constant 0 : index
    %c0_6 = arith.constant 0 : index
    %3 = vector.load %arg4[%c0_5, %c0_6] : memref<1x384xf32, #tpu.memory_space<vmem>>, vector<1x384xf32>
    %4 = vector.shape_cast %3 : vector<1x384xf32> to vector<1x384xf32>
    %5 = vector.broadcast %4 : vector<1x384xf32> to vector<16x384xf32>
    %c0_7 = arith.constant 0 : index
    %c0_8 = arith.constant 0 : index
    %6 = vector.load %arg5[%c0_7, %c0_8] : memref<1x128xf32, #tpu.memory_space<vmem>>, vector<1x128xf32>
    %7 = vector.shape_cast %6 : vector<1x128xf32> to vector<1x128xf32>
    %8 = vector.broadcast %7 : vector<1x128xf32> to vector<16x128xf32>
    %cst = arith.constant dense<0.000000e+00> : vector<16x128xf32>
    %9 = tpu.matmul %0, %2, %cst {dimension_numbers = #tpu.dot_dimension_numbers<[1], [0], [0], [1], [0, 0, 1, 1], [], []>} : vector<16x16xf32>, vector<16x128xf32>, vector<16x128xf32> -> vector<16x128xf32>
    %c0_9 = arith.constant 0 : index
    %c0_10 = arith.constant 0 : index
    %c0_11 = arith.constant 0 : index
    %10 = vector.load %arg2[%c0_9, %c0_10, %c0_11] : memref<2x128x384xf32, #tpu.memory_space<vmem>>, vector<1x128x384xf32>
    %11 = vector.shape_cast %10 : vector<1x128x384xf32> to vector<128x384xf32>
    %cst_12 = arith.constant dense<0.000000e+00> : vector<16x384xf32>
    %12 = tpu.matmul %9, %11, %cst_12 {dimension_numbers = #tpu.dot_dimension_numbers<[1], [0], [0], [1], [0, 0, 1, 1], [], []>} : vector<16x128xf32>, vector<128x384xf32>, vector<16x384xf32> -> vector<16x384xf32>
    %13 = arith.addf %12, %5 : vector<16x384xf32>
    %cst_13 = arith.constant dense<0.000000e+00> : vector<16x384xf32>
    %14 = tpu.matmul %2, %1, %cst_13 {dimension_numbers = #tpu.dot_dimension_numbers<[1], [0], [0], [1], [0, 0, 1, 1], [], []>} : vector<16x128xf32>, vector<128x384xf32>, vector<16x384xf32> -> vector<16x384xf32>
    %15 = vector.extract_strided_slice %13 {offsets = [0, 0], sizes = [16, 128], strides = [1, 1]} : vector<16x384xf32> to vector<16x128xf32>
    %16 = vector.extract_strided_slice %14 {offsets = [0, 0], sizes = [16, 128], strides = [1, 1]} : vector<16x384xf32> to vector<16x128xf32>
    %17 = arith.addf %15, %16 : vector<16x128xf32>
    %18 = arith.negf %17 : vector<16x128xf32>
    %19 = math.exp %18 : vector<16x128xf32>
    %cst_14 = arith.constant 1.000000e+00 : f32
    %20 = vector.broadcast %cst_14 : f32 to vector<16x128xf32>
    %21 = arith.addf %20, %19 : vector<16x128xf32>
    %22 = arith.divf %20, %21 : vector<16x128xf32>
    %23 = vector.extract_strided_slice %13 {offsets = [0, 128], sizes = [16, 128], strides = [1, 1]} : vector<16x384xf32> to vector<16x128xf32>
    %24 = vector.extract_strided_slice %14 {offsets = [0, 128], sizes = [16, 128], strides = [1, 1]} : vector<16x384xf32> to vector<16x128xf32>
    %25 = arith.addf %23, %24 : vector<16x128xf32>
    %26 = arith.negf %25 : vector<16x128xf32>
    %27 = math.exp %26 : vector<16x128xf32>
    %cst_15 = arith.constant 1.000000e+00 : f32
    %28 = vector.broadcast %cst_15 : f32 to vector<16x128xf32>
    %29 = arith.addf %28, %27 : vector<16x128xf32>
    %30 = arith.divf %28, %29 : vector<16x128xf32>
    %31 = vector.extract_strided_slice %13 {offsets = [0, 256], sizes = [16, 128], strides = [1, 1]} : vector<16x384xf32> to vector<16x128xf32>
    %32 = vector.extract_strided_slice %14 {offsets = [0, 256], sizes = [16, 128], strides = [1, 1]} : vector<16x384xf32> to vector<16x128xf32>
    %33 = arith.addf %32, %8 : vector<16x128xf32>
    %34 = arith.mulf %22, %33 : vector<16x128xf32>
    %35 = arith.addf %31, %34 : vector<16x128xf32>
    %36 = math.tanh %35 : vector<16x128xf32>
    %37 = arith.subf %2, %36 : vector<16x128xf32>
    %38 = arith.mulf %30, %37 : vector<16x128xf32>
    %39 = arith.addf %36, %38 : vector<16x128xf32>
    %cst_16 = arith.constant dense<0.000000e+00> : vector<16x128xf32>
    %40 = tpu.matmul %0, %39, %cst_16 {dimension_numbers = #tpu.dot_dimension_numbers<[1], [0], [0], [1], [0, 0, 1, 1], [], []>} : vector<16x16xf32>, vector<16x128xf32>, vector<16x128xf32> -> vector<16x128xf32>
    %c1 = arith.constant 1 : index
    %c0_17 = arith.constant 0 : index
    %c0_18 = arith.constant 0 : index
    %41 = vector.load %arg2[%c1, %c0_17, %c0_18] : memref<2x128x384xf32, #tpu.memory_space<vmem>>, vector<1x128x384xf32>
    %42 = vector.shape_cast %41 : vector<1x128x384xf32> to vector<128x384xf32>
    %cst_19 = arith.constant dense<0.000000e+00> : vector<16x384xf32>
    %43 = tpu.matmul %40, %42, %cst_19 {dimension_numbers = #tpu.dot_dimension_numbers<[1], [0], [0], [1], [0, 0, 1, 1], [], []>} : vector<16x128xf32>, vector<128x384xf32>, vector<16x384xf32> -> vector<16x384xf32>
    %44 = arith.addf %43, %5 : vector<16x384xf32>
    %cst_20 = arith.constant dense<0.000000e+00> : vector<16x384xf32>
    %45 = tpu.matmul %39, %1, %cst_20 {dimension_numbers = #tpu.dot_dimension_numbers<[1], [0], [0], [1], [0, 0, 1, 1], [], []>} : vector<16x128xf32>, vector<128x384xf32>, vector<16x384xf32> -> vector<16x384xf32>
    %46 = vector.extract_strided_slice %44 {offsets = [0, 0], sizes = [16, 128], strides = [1, 1]} : vector<16x384xf32> to vector<16x128xf32>
    %47 = vector.extract_strided_slice %45 {offsets = [0, 0], sizes = [16, 128], strides = [1, 1]} : vector<16x384xf32> to vector<16x128xf32>
    %48 = arith.addf %46, %47 : vector<16x128xf32>
    %49 = arith.negf %48 : vector<16x128xf32>
    %50 = math.exp %49 : vector<16x128xf32>
    %cst_21 = arith.constant 1.000000e+00 : f32
    %51 = vector.broadcast %cst_21 : f32 to vector<16x128xf32>
    %52 = arith.addf %51, %50 : vector<16x128xf32>
    %53 = arith.divf %51, %52 : vector<16x128xf32>
    %54 = vector.extract_strided_slice %44 {offsets = [0, 128], sizes = [16, 128], strides = [1, 1]} : vector<16x384xf32> to vector<16x128xf32>
    %55 = vector.extract_strided_slice %45 {offsets = [0, 128], sizes = [16, 128], strides = [1, 1]} : vector<16x384xf32> to vector<16x128xf32>
    %56 = arith.addf %54, %55 : vector<16x128xf32>
    %57 = arith.negf %56 : vector<16x128xf32>
    %58 = math.exp %57 : vector<16x128xf32>
    %cst_22 = arith.constant 1.000000e+00 : f32
    %59 = vector.broadcast %cst_22 : f32 to vector<16x128xf32>
    %60 = arith.addf %59, %58 : vector<16x128xf32>
    %61 = arith.divf %59, %60 : vector<16x128xf32>
    %62 = vector.extract_strided_slice %44 {offsets = [0, 256], sizes = [16, 128], strides = [1, 1]} : vector<16x384xf32> to vector<16x128xf32>
    %63 = vector.extract_strided_slice %45 {offsets = [0, 256], sizes = [16, 128], strides = [1, 1]} : vector<16x384xf32> to vector<16x128xf32>
    %64 = arith.addf %63, %8 : vector<16x128xf32>
    %65 = arith.mulf %53, %64 : vector<16x128xf32>
    %66 = arith.addf %62, %65 : vector<16x128xf32>
    %67 = math.tanh %66 : vector<16x128xf32>
    %68 = arith.subf %39, %67 : vector<16x128xf32>
    %69 = arith.mulf %61, %68 : vector<16x128xf32>
    %70 = arith.addf %67, %69 : vector<16x128xf32>
    %cst_23 = arith.constant 0.000000e+00 : f32
    %71 = vector.broadcast %cst_23 : f32 to vector<16x128xf32>
    %72 = arith.maximumf %70, %71 : vector<16x128xf32>
    %c0_24 = arith.constant 0 : index
    %c0_25 = arith.constant 0 : index
    %73 = vector.load %arg6[%c0_24, %c0_25] : memref<16x128xf32, #tpu.memory_space<vmem>>, vector<16x128xf32>
    tpu.vector_store %arg6[%c0_24, %c0_25], %72 {strides = array<i32>} : memref<16x128xf32, #tpu.memory_space<vmem>>, vector<16x128xf32>,
    return
  }
}

</mosaic_0001>

<bundles_post_ra>
// kernel: tpu_custom_call.1
= control target key start
LH: loop header
LB: loop body
LE: loop exit
PB: predicated region body
PF: predicated region fallthrough
CT: control target
= control target key end

     0   :  { %11 = vsyncpa [#allocation3], 0  ;;  %s2126_s0 = inlined_call_operand.hbm [shape: f32[16,128], index: 0, kind: input, shape index: {}]   ;;  %s2127_s1 = inlined_call_operand.hbm [shape: f32[16,16], index: 1, kind: input, shape index: {}]   ;;  %s2128_s2 = inlined_call_operand.hbm [shape: f32[2,128,384], index: 2, kind: input, shape index: {}]   ;;  %s2129_s3 = inlined_call_operand.hbm [shape: f32[128,384], index: 3, kind: input, shape index: {}]   ;;  %s2130_s4 = inlined_call_operand.vmem [shape: f32[1,384], index: 4, kind: input, shape index: {}]   ;;  %s2131_s5 = inlined_call_operand.vmem [shape: f32[1,128], index: 5, kind: input, shape index: {}]   ;;  %s2132_s6 = inlined_call_operand.hbm [shape: f32[16,128], index: 6, kind: output, shape index: {}]  }
   0x1   :  { %12 = vsyncpa [#allocation6], 0 }
   0x2   :  { %13 = vsyncpa [#allocation9], 0 }
   0x3   :  { %14 = vsyncpa [#allocation4], 0  ;;  %s1819_s21 = smov [#allocation5]   ;;  %s1820_s23 = smov [#allocation2]  }
   0x4   :  { %s32_s22 = sshll.u32 %s1819_s21, 4  ;;  %s20_s24 = sshll.u32 %s1820_s23, 4  ;;  %s33_s22 = int_to_ptr.vmem [resolvable:$true] %s32_s22  ;;  %s1864_s24 = int_to_ptr.vmem [resolvable:$true] %s20_s24 }
   0x5   :  { %s1701_s27 = scalar_lea.hbm %s2127_s1, 256 }
   0x6   :  { %p1702_p0 = scmp.ne.s32.totalorder %s2127_s1, %s1701_s27  ;;  %p1705_p1 = scmp.lt.u32.totalorder %s1701_s27, %s2127_s1 }
   0x8   :  { %p1707_p2 = pnand %p1705_p1, %p1702_p0 }
   0xa   :  { %1710 = shalt.err (!%p1707_p2)
}
   0xb   :  { %s1711_s8 = scalar_lea.vmem %s33_s22, 256  ;;  %p1716_p4 = scmp.lt.s32.totalorder %s33_s22, %s33_s22 }
   0xc   :  { %p1712_p3 = scmp.ne.s32.totalorder %s33_s22, %s1711_s8  ;;  %p1717_p5 = scmp.lt.s32.totalorder %s1711_s8, %s1711_s8 }
   0xe   :  { %p1718_p6 = por %p1717_p5, %p1716_p4 }
  0x10   :  { %p1719_p7 = pnand %p1718_p6, %p1712_p3 }
  0x12   :  { %1722 = shalt.err (!%p1719_p7)
}
  0x13   :  { %s1821_s9 = smov 128   ;;  %s1822_s10 = smov 8  }
  0x14   :  { %38 = dma.hbm_to_vmem [thread:$0]  %s2127_s1, 256, %s33_s22, [#allocation6], %s1821_s9, %s1821_s9, %s1822_s10  }
  0x15   :  { %s1723_s15 = scalar_lea.hbm %s2126_s0, 256 }
  0x16   :  { %p1724_p8 = scmp.ne.s32.totalorder %s2126_s0, %s1723_s15  ;;  %p1727_p9 = scmp.lt.u32.totalorder %s1723_s15, %s2126_s0 }
  0x18   :  { %p1729_p10 = pnand %p1727_p9, %p1724_p8 }
  0x1a   :  { %1732 = shalt.err (!%p1729_p10)
}
  0x1b   :  { %s1733_s20 = scalar_lea.vmem %s1864_s24, 256  ;;  %p1738_p12 = scmp.lt.s32.totalorder %s1864_s24, %s1864_s24 }
  0x1c   :  { %p1734_p11 = scmp.ne.s32.totalorder %s1864_s24, %s1733_s20  ;;  %p1739_p13 = scmp.lt.s32.totalorder %s1733_s20, %s1733_s20 }
  0x1e   :  { %p1740_p0 = por %p1739_p13, %p1738_p12 }
  0x20   :  { %p1741_p1 = pnand %p1740_p0, %p1734_p11 }
  0x22   :  { %1744 = shalt.err (!%p1741_p1)
}
  0x23   :  { %26 = dma.hbm_to_vmem [thread:$0]  %s2126_s0, 256, %s1864_s24, [#allocation3], %s1821_s9, %s1821_s9, %s1822_s10  }
  0x24   :  { %s1823_s22 = smov [#allocation7]   ;;  %s1745_s27 = scalar_lea.hbm %s2128_s2, 12288 }
  0x25   :  { %s44_s23 = sshll.u32 %s1823_s22, 4  ;;  %p1746_p2 = scmp.ne.s32.totalorder %s2128_s2, %s1745_s27  ;;  %s45_s23 = int_to_ptr.vmem [resolvable:$true] %s44_s23 }
  0x26   :  { %p1749_p3 = scmp.lt.u32.totalorder %s1745_s27, %s2128_s2 }
  0x28   :  { %p1751_p4 = pnand %p1749_p3, %p1746_p2 }
  0x2a   :  { %1754 = shalt.err (!%p1751_p4)
}
  0x2b   :  { %s1755_s8 = scalar_lea.vmem %s45_s23, 12288  ;;  %p1760_p6 = scmp.lt.s32.totalorder %s45_s23, %s45_s23 }
  0x2c   :  { %p1756_p5 = scmp.ne.s32.totalorder %s45_s23, %s1755_s8  ;;  %p1761_p7 = scmp.lt.s32.totalorder %s1755_s8, %s1755_s8 }
  0x2e   :  { %p1762_p8 = por %p1761_p7, %p1760_p6 }
  0x30   :  { %p1763_p9 = pnand %p1762_p8, %p1756_p5 }
  0x32   :  { %1766 = shalt.err (!%p1763_p9)
}
  0x33   :  { %s1824_s0 = smov 384   ;;  %s1825_s24 = smov 24  }
  0x34   :  { %50 = dma.hbm_to_vmem [thread:$0]  %s2128_s2, 12288, %s45_s23, [#allocation6], %s1824_s0, %s1824_s0, %s1825_s24  }
  0x35   :  { %s1826_s13 = smov [#allocation8]   ;;  %s1767_s17 = scalar_lea.hbm %s2129_s3, 6144 }
  0x36   :  { %s56_s14 = sshll.u32 %s1826_s13, 4  ;;  %p1768_p10 = scmp.ne.s32.totalorder %s2129_s3, %s1767_s17  ;;  %s57_s14 = int_to_ptr.vmem [resolvable:$true] %s56_s14 }
  0x37   :  { %p1771_p11 = scmp.lt.u32.totalorder %s1767_s17, %s2129_s3 }
  0x39   :  { %p1773_p12 = pnand %p1771_p11, %p1768_p10 }
  0x3b   :  { %1776 = shalt.err (!%p1773_p12)
}
  0x3c   :  { %s1777_s21 = scalar_lea.vmem %s57_s14, 6144  ;;  %p1782_p0 = scmp.lt.s32.totalorder %s57_s14, %s57_s14 }
  0x3d   :  { %p1778_p13 = scmp.ne.s32.totalorder %s57_s14, %s1777_s21  ;;  %p1783_p1 = scmp.lt.s32.totalorder %s1777_s21, %s1777_s21 }
  0x3f   :  { %p1784_p2 = por %p1783_p1, %p1782_p0 }
  0x41   :  { %p1785_p3 = pnand %p1784_p2, %p1778_p13 }
  0x43   :  { %1788 = shalt.err (!%p1785_p3)
}
  0x44   :  { %62 = dma.hbm_to_vmem [thread:$0]  %s2129_s3, 6144, %s57_s14, [#allocation9], %s1824_s0, %s1824_s0, %s1825_s24  }
  0x45   :  { %1811 = dma.done.wait [#allocation3], 256  }
  0x46   :  { %1812 = vsyncadd [#allocation3], 4294967040 }
  0x47   :  { %1813 = dma.done.wait [#allocation6], 12544  }
  0x48   :  { %1814 = vsyncadd [#allocation6], 4294954752 }
  0x49   :  { %1815 = dma.done.wait [#allocation9], 6144  }
  0x4a   :  { %1816 = vsyncadd [#allocation9], 4294961152  ;;  %vm155_vm0 = vcmask 130048   ;;  %v1925_v0 = vld [vmem:[#allocation2] sm:$0xff]  ;;  %v1927_v1 = vld [vmem:[#allocation2 + $0x8] sm:$0xff] }
  0x4b   :  { %v1929_v2 = vld [vmem:[#allocation5] sm:$0xff]  ;;  %v1371_v3 = vpack.c.bf16 %v1927_v1, %v1925_v0  ;;  %v238_v4 = vld [vmem:[#allocation7 + $0x8] sm:$0xff]  ;;  %v241_v5 = vld [vmem:[#allocation7 + $0x20] sm:$0xff] }
  0x4c   :  { %1221 = vmatprep.mubr.msk.f32.mxu0 %vm155_vm0, %v1929_v2  ;;  %v1935_v6 = vld [vmem:[#allocation5 + $0x8] sm:$0xff]  ;;  %v1375_v7 = vpack.c.bf16 %v241_v5, %v238_v4  ;;  %v237_v8 = vld [vmem:[#allocation7] sm:$0xff]  ;;  %v239_v10 = vld [vmem:[#allocation7 + $0x10] sm:$0xff] }
  0x4d   :  { %v240_v9 = vld [vmem:[#allocation7 + $0x18] sm:$0xff]  ;;  %1372 = vmatprep.subr.bf16.mxu0 %v1371_v3  ;;  %v242_v12 = vld [vmem:[#allocation7 + $0x28] sm:$0xff]  ;;  %v247_v14 = vld [vmem:[#allocation7 + $0x50] sm:$0xff] }
  0x4e   :  { %v1377_v11 = vpack.c.bf16 %v240_v9, %v237_v8  ;;  %v244_v13 = vld [vmem:[#allocation7 + $0x38] sm:$0xff]  ;;  %1374 = vmatpush3.bf16.msra.mxu0 %v1371_v3  ;;  %1376 = vmatprep.subr.bf16.mxu1 %v1375_v7  ;;  %v1407_v15 = vpack.c.bf16 %v242_v12, %v239_v10  ;;  %v243_v17 = vld [vmem:[#allocation7 + $0x30] sm:$0xff]  ;;  %v246_v18 = vld [vmem:[#allocation7 + $0x48] sm:$0xff] }
  0x4f   :  { %v1379_v16 = vpack.c.bf16 %v247_v14, %v244_v13  ;;  %v245_v19 = vld [vmem:[#allocation7 + $0x40] sm:$0xff]  ;;  %v1381_v20 = vpack.c.bf16 %v246_v18, %v243_v17  ;;  %v248_v21 = vld [vmem:[#allocation7 + $0x58] sm:$0xff]  ;;  %v250_v22 = vld [vmem:[#allocation7 + $0x68] sm:$0xff] }
  0x50   :  { %1378 = vmatpush1.bf16.msra.mxu1 %v1377_v11  ;;  %v253_v23 = vld [vmem:[#allocation7 + $0x80] sm:$0xff]  ;;  %1408 = vmatprep.subr.bf16.mxu0 %v1407_v15  ;;  %v1411_v24 = vpack.c.bf16 %v248_v21, %v245_v19  ;;  %v252_v27 = vld [vmem:[#allocation7 + $0x78] sm:$0xff]  ;;  %v251_v28 = vld [vmem:[#allocation7 + $0x70] sm:$0xff] }
  0x51   :  { %1380 = vmatprep.subr.bf16.mxu1 %v1379_v16  ;;  %v1383_v25 = vpack.c.bf16 %v253_v23, %v250_v22  ;;  %v249_v26 = vld [vmem:[#allocation7 + $0x60] sm:$0xff]  ;;  %1222 = vmatmul.mubr.msk.f32.vlgmr.msra.gmra.mrb[0].mxu0 %vm155_vm0, %v1935_v6  ;;  %v254_v29 = vld [vmem:[#allocation7 + $0x88] sm:$0xff]  ;;  %v256_v30 = vld [vmem:[#allocation7 + $0x98] sm:$0xff] }
  0x52   :  { %v259_v31 = vld [vmem:[#allocation7 + $0xb0] sm:$0xff]  ;;  %1410 = vmatpush3.bf16.msra.mxu0 %v1407_v15  ;;  %v1385_v32 = vpack.c.bf16 %v252_v27, %v249_v26  ;;  %v1415_v33 = vpack.c.bf16 %v254_v29, %v251_v28  ;;  %v258_v36 = vld [vmem:[#allocation7 + $0xa8] sm:$0xff]  ;;  %v257_v37 = vld [vmem:[#allocation7 + $0xa0] sm:$0xff] }
  0x53   :  { %1412 = vmatprep.subr.bf16.mxu0 %v1411_v24  ;;  %v255_v34 = vld [vmem:[#allocation7 + $0x90] sm:$0xff]  ;;  %v1387_v35 = vpack.c.bf16 %v259_v31, %v256_v30  ;;  %v260_v38 = vld [vmem:[#allocation7 + $0xb8] sm:$0xff]  ;;  %v262_v39 = vld [vmem:[#allocation7 + $0xc8] sm:$0xff] }
  0x54   :  { %1382 = vmatpush1.bf16.msra.mxu1 %v1381_v20  ;;  %v265_v40 = vld [vmem:[#allocation7 + $0xe0] sm:$0xff]  ;;  %v1389_v41 = vpack.c.bf16 %v258_v36, %v255_v34  ;;  %v1419_v42 = vpack.c.bf16 %v260_v38, %v257_v37  ;;  %v264_v45 = vld [vmem:[#allocation7 + $0xd8] sm:$0xff]  ;;  %v263_v46 = vld [vmem:[#allocation7 + $0xd0] sm:$0xff]  ;;  %v1827_v20 = vmov 0.0  }
  0x55   :  { %1384 = vmatprep.subr.bf16.mxu1 %v1383_v25  ;;  %v261_v43 = vld [vmem:[#allocation7 + $0xc0] sm:$0xff]  ;;  %v1391_v44 = vpack.c.bf16 %v265_v40, %v262_v39  ;;  %v266_v47 = vld [vmem:[#allocation7 + $0xe8] sm:$0xff]  ;;  %v268_v48 = vld [vmem:[#allocation7 + $0xf8] sm:$0xff]  ;;  %349 = vmatprep.mubr.f32.mxu1 %v1827_v20 }
  0x56   :  { %1414 = vmatpush3.bf16.msra.mxu0 %v1411_v24  ;;  %v271_v49 = vld [vmem:[#allocation7 + $0x110] sm:$0xff]  ;;  %v1393_v50 = vpack.c.bf16 %v264_v45, %v261_v43  ;;  %v1423_v51 = vpack.c.bf16 %v266_v47, %v263_v46  ;;  %v270_v54 = vld [vmem:[#allocation7 + $0x108] sm:$0xff]  ;;  %v269_v55 = vld [vmem:[#allocation7 + $0x100] sm:$0xff] }
  0x57   :  { %1416 = vmatprep.subr.bf16.mxu0 %v1415_v33  ;;  %v267_v52 = vld [vmem:[#allocation7 + $0xf0] sm:$0xff]  ;;  %v1395_v53 = vpack.c.bf16 %v271_v49, %v268_v48  ;;  %v272_v56 = vld [vmem:[#allocation7 + $0x118] sm:$0xff]  ;;  %v274_v57 = vld [vmem:[#allocation7 + $0x128] sm:$0xff] }
  0x58   :  { %1386 = vmatpush1.bf16.msra.mxu1 %v1385_v32  ;;  %v277_v58 = vld [vmem:[#allocation7 + $0x140] sm:$0xff]  ;;  %v1397_v59 = vpack.c.bf16 %v270_v54, %v267_v52  ;;  %v1427_v60 = vpack.c.bf16 %v272_v56, %v269_v55  ;;  %v276_v63 = vld [vmem:[#allocation7 + $0x138] sm:$0xff]  ;;  %v275_v3 = vld [vmem:[#allocation7 + $0x130] sm:$0xff] }
  0x59   :  { %1388 = vmatprep.subr.bf16.mxu1 %v1387_v35  ;;  %v273_v61 = vld [vmem:[#allocation7 + $0x120] sm:$0xff]  ;;  %v1399_v62 = vpack.c.bf16 %v277_v58, %v274_v57  ;;  %v278_v4 = vld [vmem:[#allocation7 + $0x148] sm:$0xff]  ;;  %v280_v5 = vld [vmem:[#allocation7 + $0x158] sm:$0xff] }
  0x5a   :  { %1418 = vmatpush3.bf16.msra.mxu0 %v1415_v33  ;;  %v283_v7 = vld [vmem:[#allocation7 + $0x170] sm:$0xff]  ;;  %v1401_v8 = vpack.c.bf16 %v276_v63, %v273_v61  ;;  %v1431_v9 = vpack.c.bf16 %v278_v4, %v275_v3  ;;  %v282_v12 = vld [vmem:[#allocation7 + $0x168] sm:$0xff]  ;;  %v281_v13 = vld [vmem:[#allocation7 + $0x160] sm:$0xff] }
  0x5b   :  { %1420 = vmatprep.subr.bf16.mxu0 %v1419_v42  ;;  %v279_v10 = vld [vmem:[#allocation7 + $0x150] sm:$0xff]  ;;  %v1403_v11 = vpack.c.bf16 %v283_v7, %v280_v5  ;;  %v284_v14 = vld [vmem:[#allocation7 + $0x178] sm:$0xff]  ;;  %v82_v17 = vld [vmem:[#allocation8 + $0x8] sm:$0xff] }
  0x5c   :  { %1390 = vmatpush1.bf16.msra.mxu1 %v1389_v41  ;;  %v1405_v15 = vpack.c.bf16 %v282_v12, %v279_v10  ;;  %v1435_v16 = vpack.c.bf16 %v284_v14, %v281_v13  ;;  %v85_v18 = vld [vmem:[#allocation8 + $0x20] sm:$0xff]  ;;  %v83_v21 = vld [vmem:[#allocation8 + $0x10] sm:$0xff]  ;;  %v86_v22 = vld [vmem:[#allocation8 + $0x28] sm:$0xff] }
  0x5d   :  { %1392 = vmatprep.subr.bf16.mxu1 %v1391_v44  ;;  %v1939_v19 = vpack.c.bf16 %v85_v18, %v82_v17  ;;  %v1943_v23 = vpack.c.bf16 %v86_v22, %v83_v21  ;;  %v81_v24 = vld [vmem:[#allocation8] sm:$0xff]  ;;  %v84_v25 = vld [vmem:[#allocation8 + $0x18] sm:$0xff]  ;;  %v91_v27 = vld [vmem:[#allocation8 + $0x50] sm:$0xff] }
  0x5e   :  { %1422 = vmatpush3.bf16.msra.mxu0 %v1419_v42  ;;  %v88_v26 = vld [vmem:[#allocation8 + $0x38] sm:$0xff]  ;;  %v1946_v28 = vpack.c.bf16 %v84_v25, %v81_v24  ;;  %v89_v29 = vld [vmem:[#allocation8 + $0x40] sm:$0xff]  ;;  %v87_v33 = vld [vmem:[#allocation8 + $0x30] sm:$0xff] }
  0x5f   :  { %1424 = vmatprep.subr.bf16.mxu0 %v1423_v51  ;;  %v92_v30 = vld [vmem:[#allocation8 + $0x58] sm:$0xff]  ;;  %v1948_v32 = vpack.c.bf16 %v91_v27, %v88_v26  ;;  %v90_v34 = vld [vmem:[#allocation8 + $0x48] sm:$0xff]  ;;  %v97_v37 = vld [vmem:[#allocation8 + $0x80] sm:$0xff] }
  0x60   :  { %1394 = vmatpush1.bf16.msra.mxu1 %v1393_v50  ;;  %v94_v36 = vld [vmem:[#allocation8 + $0x68] sm:$0xff]  ;;  %v1950_v38 = vpack.c.bf16 %v92_v30, %v89_v29  ;;  %v1953_v39 = vpack.c.bf16 %v90_v34, %v87_v33  ;;  %v95_v40 = vld [vmem:[#allocation8 + $0x70] sm:$0xff]  ;;  %v93_v43 = vld [vmem:[#allocation8 + $0x60] sm:$0xff] }
  0x61   :  { %1396 = vmatprep.subr.bf16.mxu1 %v1395_v53  ;;  %v98_v41 = vld [vmem:[#allocation8 + $0x88] sm:$0xff]  ;;  %v1957_v42 = vpack.c.bf16 %v97_v37, %v94_v36  ;;  %v96_v44 = vld [vmem:[#allocation8 + $0x78] sm:$0xff]  ;;  %v103_v46 = vld [vmem:[#allocation8 + $0xb0] sm:$0xff] }
  0x62   :  { %1426 = vmatpush3.bf16.msra.mxu0 %v1423_v51  ;;  %v100_v45 = vld [vmem:[#allocation8 + $0x98] sm:$0xff]  ;;  %v1962_v47 = vpack.c.bf16 %v98_v41, %v95_v40  ;;  %v1965_v48 = vpack.c.bf16 %v96_v44, %v93_v43  ;;  %v101_v49 = vld [vmem:[#allocation8 + $0xa0] sm:$0xff]  ;;  %v99_v52 = vld [vmem:[#allocation8 + $0x90] sm:$0xff] }
  0x63   :  { %1428 = vmatprep.subr.bf16.mxu0 %v1427_v60  ;;  %v104_v50 = vld [vmem:[#allocation8 + $0xb8] sm:$0xff]  ;;  %v1969_v51 = vpack.c.bf16 %v103_v46, %v100_v45  ;;  %v102_v53 = vld [vmem:[#allocation8 + $0xa8] sm:$0xff]  ;;  %v109_v55 = vld [vmem:[#allocation8 + $0xe0] sm:$0xff] }
  0x64   :  { %1398 = vmatpush1.bf16.msra.mxu1 %v1397_v59  ;;  %v106_v54 = vld [vmem:[#allocation8 + $0xc8] sm:$0xff]  ;;  %v1973_v56 = vpack.c.bf16 %v104_v50, %v101_v49  ;;  %v1976_v57 = vpack.c.bf16 %v102_v53, %v99_v52  ;;  %v107_v58 = vld [vmem:[#allocation8 + $0xd0] sm:$0xff]  ;;  %v105_v61 = vld [vmem:[#allocation8 + $0xc0] sm:$0xff] }
  0x65   :  { %1400 = vmatprep.subr.bf16.mxu1 %v1399_v62  ;;  %v110_v59 = vld [vmem:[#allocation8 + $0xe8] sm:$0xff]  ;;  %v108_v62 = vld [vmem:[#allocation8 + $0xd8] sm:$0xff]  ;;  %v115_v3 = vld [vmem:[#allocation8 + $0x110] sm:$0xff] }
  0x66   :  { %1430 = vmatpush3.bf16.msra.mxu0 %v1427_v60  ;;  %v1979_v60 = vpack.c.bf16 %v109_v55, %v106_v54  ;;  %v112_v63 = vld [vmem:[#allocation8 + $0xf8] sm:$0xff]  ;;  %v1983_v4 = vpack.c.bf16 %v110_v59, %v107_v58  ;;  %v1986_v5 = vpack.c.bf16 %v108_v62, %v105_v61  ;;  %v113_v7 = vld [vmem:[#allocation8 + $0x100] sm:$0xff]  ;;  %v111_v10 = vld [vmem:[#allocation8 + $0xf0] sm:$0xff] }
  0x67   :  { %1432 = vmatprep.subr.bf16.mxu0 %v1431_v9  ;;  %v118_v12 = vld [vmem:[#allocation8 + $0x128] sm:$0xff]  ;;  %v121_v13 = vld [vmem:[#allocation8 + $0x140] sm:$0xff]  ;;  %v120_v22 = vld [vmem:[#allocation8 + $0x138] sm:$0xff] }
  0x68   :  { %1402 = vmatpush1.bf16.msra.mxu1 %v1401_v8  ;;  %v116_v8 = vld [vmem:[#allocation8 + $0x118] sm:$0xff]  ;;  %v122_v17 = vld [vmem:[#allocation8 + $0x148] sm:$0xff]  ;;  %v1999_v18 = vpack.c.bf16 %v121_v13, %v118_v12  ;;  %v117_v21 = vld [vmem:[#allocation8 + $0x120] sm:$0xff] }
  0x69   :  { %1404 = vmatprep.subr.bf16.mxu1 %v1403_v11  ;;  %v114_v11 = vld [vmem:[#allocation8 + $0x108] sm:$0xff]  ;;  %v1993_v14 = vpack.c.bf16 %v116_v8, %v113_v7  ;;  %v124_v24 = vld [vmem:[#allocation8 + $0x158] sm:$0xff]  ;;  %v127_v25 = vld [vmem:[#allocation8 + $0x170] sm:$0xff]  ;;  %v2006_v27 = vpack.c.bf16 %v120_v22, %v117_v21 }
  0x6a   :  { %1434 = vmatpush3.bf16.msra.mxu0 %v1431_v9  ;;  %v1989_v9 = vpack.c.bf16 %v115_v3, %v112_v63  ;;  %v125_v29 = vld [vmem:[#allocation8 + $0x160] sm:$0xff]  ;;  %v128_v30 = vld [vmem:[#allocation8 + $0x178] sm:$0xff]  ;;  %v123_v33 = vld [vmem:[#allocation8 + $0x150] sm:$0xff] }
  0x6b   :  { %1436 = vmatprep.subr.bf16.mxu0 %v1435_v16  ;;  %v126_v34 = vld [vmem:[#allocation8 + $0x168] sm:$0xff]  ;;  %v711_v40 = vld [vmem:[#allocation7 + $0x1a0] sm:$0xff]  ;;  %v710_v44 = vld [vmem:[#allocation7 + $0x198] sm:$0xff] }
  0x6c   :  { %1406 = vmatpush1.bf16.msra.mxu1 %v1405_v15  ;;  %v1996_v15 = vpack.c.bf16 %v114_v11, %v111_v10  ;;  %v2016_v36 = vpack.c.bf16 %v126_v34, %v123_v33  ;;  %v708_v37 = vld [vmem:[#allocation7 + $0x188] sm:$0xff]  ;;  %v707_v41 = vld [vmem:[#allocation7 + $0x180] sm:$0xff]  ;;  %v714_v46 = vld [vmem:[#allocation7 + $0x1b8] sm:$0xff] }
  0x6d   :  { %1440 = vmatprep.subr.bf16.mxu1 %v1939_v19  ;;  %v1507_v43 = vpack.c.bf16 %v711_v40, %v708_v37  ;;  %v1509_v45 = vpack.c.bf16 %v710_v44, %v707_v41  ;;  %v717_v49 = vld [vmem:[#allocation7 + $0x1d0] sm:$0xff]  ;;  %v716_v53 = vld [vmem:[#allocation7 + $0x1c8] sm:$0xff]  ;;  %v723_v55 = vld [vmem:[#allocation7 + $0x200] sm:$0xff] }
  0x6e   :  { %1438 = vmatpush3.bf16.msra.mxu0 %v1435_v16  ;;  %v119_v16 = vld [vmem:[#allocation8 + $0x130] sm:$0xff]  ;;  %v1511_v52 = vpack.c.bf16 %v717_v49, %v714_v46  ;;  %v719_v58 = vld [vmem:[#allocation7 + $0x1e0] sm:$0xff]  ;;  %v722_v61 = vld [vmem:[#allocation7 + $0x1f8] sm:$0xff] }
  0x6f   :  { %1472 = vmatprep.subr.bf16.mxu0 %v1943_v23  ;;  %v2003_v26 = vpack.c.bf16 %v122_v17, %v119_v16  ;;  %v713_v50 = vld [vmem:[#allocation7 + $0x1b0] sm:$0xff]  ;;  %v1517_v62 = vpack.c.bf16 %v722_v61, %v719_v58  ;;  %v726_v63 = vld [vmem:[#allocation7 + $0x218] sm:$0xff]  ;;  %v728_v10 = vld [vmem:[#allocation7 + $0x228] sm:$0xff]  ;;  %v133_v58 = vlaneseq }
  0x70   :  { %v1513_v54 = vpack.c.bf16 %v716_v53, %v713_v50  ;;  %v729_v3 = vld [vmem:[#allocation7 + $0x230] sm:$0xff]  ;;  %v732_v12 = vld [vmem:[#allocation7 + $0x248] sm:$0xff]  ;;  %v735_v13 = vld [vmem:[#allocation7 + $0x260] sm:$0xff] }
  0x71   :  { %v725_v7 = vld [vmem:[#allocation7 + $0x210] sm:$0xff]  ;;  %v1519_v8 = vpack.c.bf16 %v729_v3, %v726_v63  ;;  %v731_v16 = vld [vmem:[#allocation7 + $0x240] sm:$0xff]  ;;  %v1523_v17 = vpack.c.bf16 %v735_v13, %v732_v12  ;;  %v734_v21 = vld [vmem:[#allocation7 + $0x258] sm:$0xff] }
  0x72   :  { %v1521_v11 = vpack.c.bf16 %v728_v10, %v725_v7  ;;  %v1525_v22 = vpack.c.bf16 %v734_v21, %v731_v16  ;;  %v740_v33 = vld [vmem:[#allocation7 + $0x288] sm:$0xff]  ;;  %v747_v40 = vld [vmem:[#allocation7 + $0x2c0] sm:$0xff]  ;;  %v746_v44 = vld [vmem:[#allocation7 + $0x2b8] sm:$0xff] }
  0x73   :  { %v744_v37 = vld [vmem:[#allocation7 + $0x2a8] sm:$0xff]  ;;  %v743_v41 = vld [vmem:[#allocation7 + $0x2a0] sm:$0xff]  ;;  %v750_v46 = vld [vmem:[#allocation7 + $0x2d8] sm:$0xff] }
  0x74   :  { %v753_v49 = vld [vmem:[#allocation7 + $0x2f0] sm:$0xff]  ;;  %v752_v53 = vld [vmem:[#allocation7 + $0x2e8] sm:$0xff] }
  0x75   :  { %v749_v50 = vld [vmem:[#allocation7 + $0x2d0] sm:$0xff] }
 0x124   :  { %v1223_v31 = vpop.f32.mrb[0].mxu0 }
 0x125   :  { %v228_v35 = vpop.f32.mrb[1].mxu0 }
 0x126   :  { %350 = vmatmul.mubr.f32.vlgmr.msra.gmra.mrb[0].mxu1 %v228_v35  ;;  %1256 = vmatprep.mubr.f32.mxu0 %v228_v35  ;;  %v2013_v35 = vpack.c.bf16 %v128_v30, %v125_v29  ;;  %v737_v29 = vld [vmem:[#allocation7 + $0x270] sm:$0xff] }
 0x127   :  { %1442 = vmatpush1.bf16.msra.mxu1 %v1946_v28  ;;  %1257 = vmatmul.mubr.f32.vlgmr.msra.gmra.mrb[2].mxu0 %v1223_v31  ;;  %v1529_v34 = vpack.c.bf16 %v740_v33, %v737_v29 }
 0x128   :  { %355 = vmatprep.mubr.f32.mxu1 %v1827_v20  ;;  %1444 = vmatprep.subr.bf16.mxu1 %v1948_v32 }
 0x129   :  { %1474 = vmatpush3.bf16.msra.mxu0 %v1943_v23  ;;  %1291 = vmatprep.mubr.f32.mxu0 %v1925_v0 }
 0x12a   :  { %356 = vmatmul.mubr.f32.gmra.mrb[2].mxu1 %v1223_v31  ;;  %1476 = vmatprep.subr.bf16.mxu0 %v1950_v38  ;;  %v2009_v31 = vpack.c.bf16 %v127_v25, %v124_v24  ;;  %v738_v24 = vld [vmem:[#allocation7 + $0x278] sm:$0xff]  ;;  %v741_v25 = vld [vmem:[#allocation7 + $0x290] sm:$0xff] }
 0x12b   :  { %1446 = vmatpush1.bf16.msra.mxu1 %v1953_v39  ;;  %501 = vmatprep.mubr.f32.mxu1 %v1827_v20  ;;  %v1527_v30 = vpack.c.bf16 %v741_v25, %v738_v24 }
 0x12c   :  { %1448 = vmatprep.subr.bf16.mxu1 %v1957_v42 }
 0x12d   :  { %1478 = vmatpush3.bf16.msra.mxu0 %v1950_v38 }
 0x12e   :  { %1480 = vmatprep.subr.bf16.mxu0 %v1962_v47 }
 0x12f   :  { %1450 = vmatpush1.bf16.msra.mxu1 %v1965_v48 }
 0x130   :  { %1452 = vmatprep.subr.bf16.mxu1 %v1969_v51 }
 0x131   :  { %1482 = vmatpush3.bf16.msra.mxu0 %v1962_v47 }
 0x132   :  { %1484 = vmatprep.subr.bf16.mxu0 %v1973_v56 }
 0x133   :  { %1454 = vmatpush1.bf16.msra.mxu1 %v1976_v57 }
 0x134   :  { %1456 = vmatprep.subr.bf16.mxu1 %v1979_v60 }
 0x135   :  { %1486 = vmatpush3.bf16.msra.mxu0 %v1973_v56 }
 0x136   :  { %1488 = vmatprep.subr.bf16.mxu0 %v1983_v4 }
 0x137   :  { %1458 = vmatpush1.bf16.msra.mxu1 %v1986_v5 }
 0x138   :  { %1460 = vmatprep.subr.bf16.mxu1 %v1989_v9 }
 0x139   :  { %1490 = vmatpush3.bf16.msra.mxu0 %v1983_v4 }
 0x13a   :  { %1492 = vmatprep.subr.bf16.mxu0 %v1993_v14 }
 0x13b   :  { %1462 = vmatpush1.bf16.msra.mxu1 %v1996_v15 }
 0x13c   :  { %1464 = vmatprep.subr.bf16.mxu1 %v1999_v18 }
 0x13d   :  { %1494 = vmatpush3.bf16.msra.mxu0 %v1993_v14 }
 0x13e   :  { %1496 = vmatprep.subr.bf16.mxu0 %v2003_v26 }
 0x13f   :  { %1466 = vmatpush1.bf16.msra.mxu1 %v2006_v27 }
 0x140   :  { %1468 = vmatprep.subr.bf16.mxu1 %v2009_v31 }
 0x141   :  { %1498 = vmatpush3.bf16.msra.mxu0 %v2003_v26 }
 0x142   :  { %1500 = vmatprep.subr.bf16.mxu0 %v2013_v35 }
 0x143   :  { %1470 = vmatpush1.bf16.msra.mxu1 %v2016_v36 }
 0x144   :  { %1508 = vmatprep.subr.bf16.mxu1 %v1507_v43  ;;  %v1531_v43 = vpack.c.bf16 %v747_v40, %v744_v37 }
 0x145   :  { %1502 = vmatpush3.bf16.msra.mxu0 %v2013_v35 }
 0x146   :  { %502 = vmatmul.mubr.f32.vlgmr.msra.gmra.mrb[0].mxu1 %v1925_v0 }
 0x147   :  { %507 = vmatprep.mubr.f32.mxu1 %v1827_v20  ;;  %1510 = vmatpush1.bf16.msra.mxu1 %v1509_v45  ;;  %v1533_v45 = vpack.c.bf16 %v746_v44, %v743_v41 }
 0x148   :  { %1292 = vmatmul.mubr.f32.vlgmr.msra.gmra.mrb[4].mxu0 %v1927_v1  ;;  %1512 = vmatprep.subr.bf16.mxu1 %v1511_v52  ;;  %v1535_v52 = vpack.c.bf16 %v753_v49, %v750_v46 }
 0x149   :  { %1298 = vmatprep.mubr.msk.f32.mxu0 %vm155_vm0, %v1929_v2  ;;  %v720_v2 = vld [vmem:[#allocation7 + $0x1e8] sm:$0xff] }
 0x14a   :  { %508 = vmatmul.mubr.f32.gmra.mrb[2].mxu1 %v1927_v1  ;;  %v1515_v59 = vpack.c.bf16 %v723_v55, %v720_v2 }
 0x14b   :  { %819 = vmatprep.mubr.f32.mxu1 %v1827_v20  ;;  %1514 = vmatpush1.bf16.msra.mxu1 %v1513_v54  ;;  %v1537_v54 = vpack.c.bf16 %v752_v53, %v749_v50 }
 0x14c   :  { %1516 = vmatprep.subr.bf16.mxu1 %v1515_v59  ;;  %v134_v59 = vshrl.u32 %v133_v58, 7 }
 0x14e   :  { %v135_v61 = vsub.s32 0, %v134_v59  ;;  %v143_v41 = vsub.s32 2, %v134_v59 }
 0x14f   :  { %1518 = vmatpush1.bf16.msra.mxu1 %v1517_v62  ;;  %v131_v62 = vld [vmem:[%s2130_s4] sm:$0x7] }
 0x150   :  { %1520 = vmatprep.subr.bf16.mxu1 %v1519_v8  ;;  %v2034_v63 = vrot.slane %v131_v62, %v135_v61  ;;  %v139_v8 = vsub.s32 1, %v134_v59  ;;  %v2047_v44 = vrot.slane %v131_v62, %v143_v41  ;;  %v727_v41 = vld [vmem:[#allocation7 + $0x220] sm:$0xff] }
 0x152   :  { %v2037_v16 = vrot.slane %v131_v62, %v139_v8 }
 0x153   :  { %1522 = vmatpush1.bf16.msra.mxu1 %v1521_v11 }
 0x154   :  { %1524 = vmatprep.subr.bf16.mxu1 %v1523_v17 }
 0x157   :  { %1526 = vmatpush1.bf16.msra.mxu1 %v1525_v22 }
 0x158   :  { %1528 = vmatprep.subr.bf16.mxu1 %v1527_v30 }
 0x15b   :  { %1530 = vmatpush1.bf16.msra.mxu1 %v1529_v34 }
 0x15c   :  { %1532 = vmatprep.subr.bf16.mxu1 %v1531_v43  ;;  %v2045_v43 = vld [vmem:[%s2131_s5] ss:$0 sm:$0xff]  ;;  %s1828_s5 = smov [#allocation10]  }
 0x15d   :  { %s1110_s26 = sshll.u32 %s1828_s5, 4  ;;  %s1111_s26 = int_to_ptr.vmem [resolvable:$true] %s1110_s26 }
 0x15e   :  { %s1789_s27 = scalar_lea.vmem %s1111_s26, 256  ;;  %p1794_p5 = scmp.lt.s32.totalorder %s1111_s26, %s1111_s26 }
 0x15f   :  { %1534 = vmatpush1.bf16.msra.mxu1 %v1533_v45  ;;  %p1790_p4 = scmp.ne.s32.totalorder %s1111_s26, %s1789_s27  ;;  %p1795_p6 = scmp.lt.s32.totalorder %s1789_s27, %s1789_s27 }
 0x160   :  { %1536 = vmatprep.subr.bf16.mxu1 %v1535_v52 }
 0x161   :  { %p1796_p7 = por %p1795_p6, %p1794_p5 }
 0x163   :  { %1538 = vmatpush1.bf16.msra.mxu1 %v1537_v54  ;;  %p1797_p8 = pnand %p1796_p7, %p1790_p4 }
 0x164   :  { %1572 = vmatprep.subr.bf16.mxu1 %v1939_v19 }
 0x1fa   :  { %v1258_v2 = vpop.f32.mrb[2].mxu0 }
 0x1fb   :  { %v428_v55 = vpop.f32.mrb[3].mxu0 }
 0x1fc   :  { %v429_v50 = vadd.f32 %v428_v55, %v2047_v44 }
 0x219   :  { %v503_v3 = vpop.f32.mrb[0].mxu1 }
 0x21a   :  { %v1635_v7 = vadd.f32 %v503_v3, %v2034_v63  ;;  %v505_v10 = vpop.f32.mrb[1].mxu1  ;;  %v434_v3 = vadd.f32 %v1258_v2, %v2047_v44  ;;  %v709_v2 = vld [vmem:[#allocation7 + $0x190] sm:$0xff] }
 0x21b   :  { %v1293_v11 = vpop.f32.mrb[4].mxu0  ;;  %v1636_v24 = vadd.f32 %v505_v10, %v2037_v16 }
 0x21c   :  { %v1127_v12 = vmul.f32 -1.442695, %v1635_v7  ;;  %v580_v13 = vpop.f32.mrb[5].mxu0  ;;  %v618_v52 = vadd.f32 %v1293_v11, %v2045_v43 }
 0x21d   :  { %v509_v19 = vpop.f32.mrb[2].mxu1  ;;  %v1129_v25 = vmul.f32 -1.442695, %v1636_v24  ;;  %v617_v45 = vadd.f32 %v2045_v43, %v580_v13  ;;  %v712_v24 = vld [vmem:[#allocation7 + $0x1a8] sm:$0xff] }
 0x21e   :  { %1661 = vpow2.f32 %v1127_v12  ;;  %v1637_v17 = vadd.f32 %v509_v19, %v2034_v63  ;;  %v511_v21 = vpop.f32.mrb[3].mxu1 }
 0x21f   :  { %v1638_v29 = vadd.f32 %v511_v21, %v2037_v16 }
 0x220   :  { %v1128_v22 = vmul.f32 -1.442695, %v1637_v17 }
 0x221   :  { %v1130_v34 = vmul.f32 -1.442695, %v1638_v29 }
 0x222   :  { %1663 = vpow2.f32 %v1128_v22 }
 0x223   :  { %1665 = vpow2.f32 %v1129_v25 }
 0x228   :  { %v1662_v30 = vpop.eup %1661 }
 0x229   :  { %v597_v33 = vadd.f32 1.0, %v1662_v30  ;;  %v1539_v30 = vpack.c.bf16 %v712_v24, %v709_v2 }
 0x22b   :  { %1667 = vrcp.f32 %v597_v33  ;;  %v715_v33 = vld [vmem:[#allocation7 + $0x1c0] sm:$0xff] }
 0x22c   :  { %v1664_v37 = vpop.eup %1663  ;;  %1669 = vpow2.f32 %v1130_v34  ;;  %v718_v34 = vld [vmem:[#allocation7 + $0x1d8] sm:$0xff] }
 0x22d   :  { %v598_v40 = vadd.f32 1.0, %v1664_v37  ;;  %v1666_v46 = vpop.eup %1665  ;;  %v721_v37 = vld [vmem:[#allocation7 + $0x1f0] sm:$0xff] }
 0x22e   :  { %v611_v58 = vadd.f32 1.0, %v1666_v46 }
 0x22f   :  { %1671 = vrcp.f32 %v598_v40 }
 0x235   :  { %v1668_v49 = vpop.eup %1667 }
 0x236   :  { %v619_v53 = vmul.f32 %v1668_v49, %v617_v45  ;;  %v1670_v54 = vpop.eup %1669  ;;  %v730_v45 = vld [vmem:[#allocation7 + $0x238] sm:$0xff]  ;;  %v733_v49 = vld [vmem:[#allocation7 + $0x250] sm:$0xff] }
 0x237   :  { %v612_v62 = vadd.f32 1.0, %v1670_v54  ;;  %v1551_v46 = vpack.c.bf16 %v730_v45, %v727_v41  ;;  %v742_v54 = vld [vmem:[#allocation7 + $0x298] sm:$0xff] }
 0x238   :  { %v621_v59 = vadd.f32 %v619_v53, %v429_v50  ;;  %v736_v50 = vld [vmem:[#allocation7 + $0x268] sm:$0xff]  ;;  %v739_v53 = vld [vmem:[#allocation7 + $0x280] sm:$0xff] }
 0x239   :  { %v1672_v61 = vpop.eup %1671 }
 0x23a   :  { %v620_v7 = vmul.f32 %v1672_v61, %v618_v52  ;;  %1673 = vtanh.f32 %v621_v59  ;;  %v1555_v52 = vpack.c.bf16 %v736_v50, %v733_v49  ;;  %v745_v59 = vld [vmem:[#allocation7 + $0x2b0] sm:$0xff] }
 0x23b   :  { %1675 = vrcp.f32 %v611_v58  ;;  %v1559_v58 = vpack.c.bf16 %v742_v54, %v739_v53 }
 0x23c   :  { %v622_v8 = vadd.f32 %v620_v7, %v434_v3  ;;  %v751_v3 = vld [vmem:[#allocation7 + $0x2e0] sm:$0xff]  ;;  %v754_v7 = vld [vmem:[#allocation7 + $0x2f8] sm:$0xff] }
 0x23e   :  { %1677 = vtanh.f32 %v622_v8 }
 0x23f   :  { %1679 = vrcp.f32 %v612_v62  ;;  %v1567_v62 = vpack.c.bf16 %v754_v7, %v751_v3 }
 0x244   :  { %v1674_v10 = vpop.eup %1673 }
 0x245   :  { %v625_v12 = vsub.f32 %v1925_v0, %v1674_v10  ;;  %v1676_v55 = vpop.eup %1675  ;;  %v1543_v0 = vpack.c.bf16 %v718_v34, %v715_v33 }
 0x247   :  { %v627_v13 = vmul.f32 %v1676_v55, %v625_v12 }
 0x248   :  { %v1678_v11 = vpop.eup %1677 }
 0x249   :  { %v626_v19 = vsub.f32 %v1927_v1, %v1678_v11  ;;  %v2055_v17 = vadd.f32 %v1674_v10, %v627_v13  ;;  %v1680_v21 = vpop.eup %1679  ;;  %v724_v1 = vld [vmem:[#allocation7 + $0x208] sm:$0xff] }
 0x24a   :  { %v1547_v40 = vpack.c.bf16 %v724_v1, %v721_v37 }
 0x24b   :  { %v628_v22 = vmul.f32 %v1680_v21, %v626_v19 }
 0x24d   :  { %v2057_v25 = vadd.f32 %v1678_v11, %v628_v22 }
 0x24f   :  { %v1503_v29 = vpack.c.bf16 %v2057_v25, %v2055_v17 }
 0x251   :  { %1504 = vmatprep.subr.bf16.mxu0 %v1503_v29 }
 0x252   :  { %1506 = vmatpush3.bf16.msra.mxu0 %v1503_v29 }
 0x253   :  { %1540 = vmatprep.subr.bf16.mxu0 %v1539_v30 }
 0x255   :  { %1299 = vmatmul.mubr.msk.f32.vlgmr.msra.gmra.mrb[6].mxu0 %vm155_vm0, %v1935_v6  ;;  %v748_v6 = vld [vmem:[#allocation7 + $0x2c8] sm:$0xff] }
 0x256   :  { %1542 = vmatpush3.bf16.msra.mxu0 %v1539_v30  ;;  %v1563_v61 = vpack.c.bf16 %v748_v6, %v745_v59 }
 0x257   :  { %1544 = vmatprep.subr.bf16.mxu0 %v1543_v0 }
 0x25a   :  { %1546 = vmatpush3.bf16.msra.mxu0 %v1543_v0 }
 0x25b   :  { %1548 = vmatprep.subr.bf16.mxu0 %v1547_v40 }
 0x25e   :  { %1550 = vmatpush3.bf16.msra.mxu0 %v1547_v40 }
 0x25f   :  { %1552 = vmatprep.subr.bf16.mxu0 %v1551_v46 }
 0x262   :  { %1554 = vmatpush3.bf16.msra.mxu0 %v1551_v46 }
 0x263   :  { %1556 = vmatprep.subr.bf16.mxu0 %v1555_v52 }
 0x266   :  { %1558 = vmatpush3.bf16.msra.mxu0 %v1555_v52 }
 0x267   :  { %1560 = vmatprep.subr.bf16.mxu0 %v1559_v58 }
 0x26a   :  { %1562 = vmatpush3.bf16.msra.mxu0 %v1559_v58 }
 0x26b   :  { %1564 = vmatprep.subr.bf16.mxu0 %v1563_v61 }
 0x26e   :  { %1566 = vmatpush3.bf16.msra.mxu0 %v1563_v61 }
 0x26f   :  { %1568 = vmatprep.subr.bf16.mxu0 %v1567_v62 }
 0x272   :  { %1570 = vmatpush3.bf16.msra.mxu0 %v1567_v62 }
 0x273   :  { %1604 = vmatprep.subr.bf16.mxu0 %v1943_v23 }
 0x328   :  { %v1300_v8 = vpop.f32.mrb[6].mxu0 }
 0x329   :  { %v697_v10 = vpop.f32.mrb[7].mxu0 }
 0x32a   :  { %820 = vmatmul.mubr.f32.vlgmr.msra.gmra.mrb[4].mxu1 %v697_v10  ;;  %1333 = vmatprep.mubr.f32.mxu0 %v697_v10 }
 0x32b   :  { %1574 = vmatpush1.bf16.msra.mxu1 %v1946_v28  ;;  %1334 = vmatmul.mubr.f32.vlgmr.msra.gmra.mrb[8].mxu0 %v1300_v8 }
 0x32c   :  { %1606 = vmatpush3.bf16.msra.mxu0 %v1943_v23  ;;  %1368 = vmatprep.mubr.f32.mxu0 %v2055_v17 }
 0x32d   :  { %825 = vmatprep.mubr.f32.mxu1 %v1827_v20  ;;  %1576 = vmatprep.subr.bf16.mxu1 %v1948_v32 }
 0x32e   :  { %826 = vmatmul.mubr.f32.gmra.mrb[6].mxu1 %v1300_v8  ;;  %1608 = vmatprep.subr.bf16.mxu0 %v1950_v38 }
 0x32f   :  { %1578 = vmatpush1.bf16.msra.mxu1 %v1953_v39  ;;  %971 = vmatprep.mubr.f32.mxu1 %v1827_v20 }
 0x330   :  { %1610 = vmatpush3.bf16.msra.mxu0 %v1950_v38  ;;  %1580 = vmatprep.subr.bf16.mxu1 %v1957_v42 }
 0x331   :  { %1612 = vmatprep.subr.bf16.mxu0 %v1962_v47 }
 0x333   :  { %1582 = vmatpush1.bf16.msra.mxu1 %v1965_v48 }
 0x334   :  { %1614 = vmatpush3.bf16.msra.mxu0 %v1962_v47  ;;  %1584 = vmatprep.subr.bf16.mxu1 %v1969_v51 }
 0x335   :  { %1616 = vmatprep.subr.bf16.mxu0 %v1973_v56 }
 0x337   :  { %1586 = vmatpush1.bf16.msra.mxu1 %v1976_v57 }
 0x338   :  { %1618 = vmatpush3.bf16.msra.mxu0 %v1973_v56  ;;  %1588 = vmatprep.subr.bf16.mxu1 %v1979_v60 }
 0x339   :  { %1620 = vmatprep.subr.bf16.mxu0 %v1983_v4 }
 0x33b   :  { %1590 = vmatpush1.bf16.msra.mxu1 %v1986_v5 }
 0x33c   :  { %1622 = vmatpush3.bf16.msra.mxu0 %v1983_v4  ;;  %1592 = vmatprep.subr.bf16.mxu1 %v1989_v9 }
 0x33d   :  { %1624 = vmatprep.subr.bf16.mxu0 %v1993_v14 }
 0x33f   :  { %1594 = vmatpush1.bf16.msra.mxu1 %v1996_v15 }
 0x340   :  { %1626 = vmatpush3.bf16.msra.mxu0 %v1993_v14  ;;  %1596 = vmatprep.subr.bf16.mxu1 %v1999_v18 }
 0x341   :  { %1628 = vmatprep.subr.bf16.mxu0 %v2003_v26 }
 0x343   :  { %1598 = vmatpush1.bf16.msra.mxu1 %v2006_v27 }
 0x344   :  { %1630 = vmatpush3.bf16.msra.mxu0 %v2003_v26  ;;  %1600 = vmatprep.subr.bf16.mxu1 %v2009_v31 }
 0x345   :  { %1632 = vmatprep.subr.bf16.mxu0 %v2013_v35 }
 0x347   :  { %1602 = vmatpush1.bf16.msra.mxu1 %v2016_v36 }
 0x348   :  { %1634 = vmatpush3.bf16.msra.mxu0 %v2013_v35 }
 0x34a   :  { %972 = vmatmul.mubr.f32.vlgmr.msra.gmra.mrb[4].mxu1 %v2055_v17 }
 0x34b   :  { %1369 = vmatmul.mubr.f32.vlgmr.msra.gmra.mrb[10].mxu0 %v2057_v25  ;;  %977 = vmatprep.mubr.f32.mxu1 %v1827_v20 }
 0x34e   :  { %978 = vmatmul.mubr.f32.gmra.mrb[6].mxu1 %v2057_v25 }
 0x3fe   :  { %v1335_v23 = vpop.f32.mrb[8].mxu0 }
 0x3ff   :  { %v898_v28 = vpop.f32.mrb[9].mxu0  ;;  %v904_v19 = vadd.f32 %v1335_v23, %v2047_v44 }
 0x400   :  { %v899_v36 = vadd.f32 %v898_v28, %v2047_v44 }
 0x41d   :  { %v973_v32 = vpop.f32.mrb[4].mxu1 }
 0x41e   :  { %v1639_v38 = vadd.f32 %v973_v32, %v2034_v63  ;;  %v975_v39 = vpop.f32.mrb[5].mxu1  ;;  %v1370_v42 = vpop.f32.mrb[10].mxu0 }
 0x41f   :  { %v1050_v47 = vpop.f32.mrb[11].mxu0  ;;  %v1640_v4 = vadd.f32 %v975_v39, %v2037_v16 }
 0x420   :  { %v1133_v48 = vmul.f32 -1.442695, %v1639_v38  ;;  %v1087_v31 = vadd.f32 %v2045_v43, %v1050_v47 }
 0x421   :  { %v979_v51 = vpop.f32.mrb[6].mxu1  ;;  %v1135_v20 = vmul.f32 -1.442695, %v1640_v4 }
 0x422   :  { %1681 = vpow2.f32 %v1133_v48  ;;  %v1641_v56 = vadd.f32 %v979_v51, %v2034_v63  ;;  %v981_v57 = vpop.f32.mrb[7].mxu1 }
 0x423   :  { %v1642_v5 = vadd.f32 %v981_v57, %v2037_v16  ;;  %v1088_v16 = vadd.f32 %v1370_v42, %v2045_v43 }
 0x424   :  { %v1134_v60 = vmul.f32 -1.442695, %v1641_v56 }
 0x425   :  { %v1136_v15 = vmul.f32 -1.442695, %v1642_v5 }
 0x426   :  { %1683 = vpow2.f32 %v1134_v60 }
 0x427   :  { %1685 = vpow2.f32 %v1135_v20 }
 0x42c   :  { %v1682_v9 = vpop.eup %1681 }
 0x42d   :  { %v1067_v14 = vadd.f32 1.0, %v1682_v9 }
 0x42f   :  { %1687 = vrcp.f32 %v1067_v14 }
 0x430   :  { %v1684_v18 = vpop.eup %1683  ;;  %1689 = vpow2.f32 %v1136_v15 }
 0x431   :  { %v1068_v26 = vadd.f32 1.0, %v1684_v18  ;;  %v1686_v27 = vpop.eup %1685 }
 0x432   :  { %v1081_v55 = vadd.f32 1.0, %v1686_v27 }
 0x433   :  { %1691 = vrcp.f32 %v1068_v26 }
 0x439   :  { %v1688_v35 = vpop.eup %1687 }
 0x43a   :  { %v1089_v63 = vmul.f32 %v1688_v35, %v1087_v31  ;;  %v1690_v12 = vpop.eup %1689 }
 0x43b   :  { %v1082_v22 = vadd.f32 1.0, %v1690_v12 }
 0x43c   :  { %v1091_v13 = vadd.f32 %v1089_v63, %v899_v36 }
 0x43d   :  { %v1692_v11 = vpop.eup %1691 }
 0x43e   :  { %1693 = vtanh.f32 %v1091_v13  ;;  %v1090_v21 = vmul.f32 %v1692_v11, %v1088_v16 }
 0x43f   :  { %1695 = vrcp.f32 %v1081_v55 }
 0x440   :  { %v1092_v2 = vadd.f32 %v1090_v21, %v904_v19 }
 0x442   :  { %1697 = vtanh.f32 %v1092_v2 }
 0x443   :  { %1699 = vrcp.f32 %v1082_v22 }
 0x448   :  { %v1694_v24 = vpop.eup %1693 }
 0x449   :  { %v1095_v29 = vsub.f32 %v2055_v17, %v1694_v24  ;;  %v1696_v30 = vpop.eup %1695 }
 0x44b   :  { %v1097_v33 = vmul.f32 %v1696_v30, %v1095_v29 }
 0x44c   :  { %v1698_v34 = vpop.eup %1697 }
 0x44d   :  { %v1096_v0 = vsub.f32 %v2057_v25, %v1698_v34  ;;  %v1099_v43 = vadd.f32 %v1694_v24, %v1097_v33  ;;  %v1700_v37 = vpop.eup %1699 }
 0x44f   :  { %v1098_v1 = vmul.f32 %v1700_v37, %v1096_v0  ;;  %v1101_v40 = vmax.f32 %v1099_v43, 0.0 }
 0x451   :  { %v1100_v44 = vadd.f32 %v1698_v34, %v1098_v1  ;;  %1103 = vst [vmem:[#allocation10] sm:$0xff] %v1101_v40 }
 0x453   :  { %v1102_v41 = vmax.f32 %v1100_v44, 0.0 }
 0x455   :  { %1104 = vst [vmem:[#allocation10 + $0x8] sm:$0xff] %v1102_v41 }
 0x456   :  { %1800 = shalt.err (!%p1797_p8)
}
 0x457   :  { %s1801_s30 = scalar_lea.hbm %s2132_s6, 256 }
 0x458   :  { %p1802_p9 = scmp.ne.s32.totalorder %s2132_s6, %s1801_s30  ;;  %p1805_p10 = scmp.lt.u32.totalorder %s1801_s30, %s2132_s6 }
 0x45a   :  { %p1807_p11 = pnand %p1805_p10, %p1802_p9 }
 0x45c   :  { %1810 = shalt.err (!%p1807_p11)
}
 0x45d   :  { %1116 = dma.vmem_to_hbm [thread:$0]  %s1111_s26, 256, %s2132_s6, [#allocation4], %s1821_s9, %s1821_s9, %s1822_s10  }
 0x45e   :  { %1817 = dma.done.wait [#allocation4], 256  }
 0x45f   :  { %1818 = vsyncadd [#allocation4], 4294967040 }
 0x460   :  { %1120 = vsyncpa [#allocation3], 1 }
 0x461   :  { %1121 = vsyncpa [#allocation6], 1 }
 0x462   :  { %1122 = vsyncpa [#allocation9], 1 }
 0x463   :  { %1123 = vsyncpa [#allocation4], 1 }

</bundles_post_ra>
